<compile_context>
chip_gen: v7x
topology: tpu7x:2x2x1
jax: 0.10.0
libtpu: 0.0.40
codegen_flags: <defaults>
</compile_context>

<pallas_src>
import functools

import jax
import jax.numpy as jnp
from jax.experimental import pallas as pl
from jax.experimental.pallas import tpu as pltpu

PAD_ID = 0  # ignore_index for response labels (base_tokenizer.pad_token_id)


def _round_up(x, m):
    return ((x + m - 1) // m) * m


def _vmem_budget():
    """Generation-aware scoped-VMEM budget (75% of physical per-core VMEM)."""
    try:
        cap = int(pltpu.get_tpu_info().vmem_capacity_bytes)
        return int(cap * 0.75)
    except Exception:
        return 48 * 1024 * 1024  # conservative: fits v7x's 64 MiB physical


def _vmem_need(tile_r, tile_v, hidden_dim, in_dsz=2, out_dsz=2):
    """Double-buffered footprint of one (tile_r, tile_v) pipeline step."""
    return (2 * tile_r * hidden_dim * in_dsz          # hidden rows
            + 2 * hidden_dim * tile_v * in_dsz        # weight stream
            + 2 * 2 * tile_r * tile_v * out_dsz       # 2 bf16 logits slabs
            + 2 * tile_r * 4                          # labels
            + 2 * 2 * tile_r * 4                      # logprobs + entropies
            + 4 * tile_r * 4)                         # scratch accumulators


def _choose_tiles(R, H, V, budget):
    """Pick (tile_r, tile_v): largest row tile (weight re-stream amortization)
    that fits the VMEM budget, with >=2 row tiles when R allows (megacore)."""
    R16 = _round_up(max(R, 16), 16)
    if R16 >= 32:
        max_tr = max(16, min(1024, (R16 // 2) // 16 * 16))
    else:
        max_tr = R16
    tr_cands = [t for t in (1024, 512, 256, 128, 64, 32, 16) if t <= max_tr]
    if not tr_cands:
        tr_cands = [max_tr]
    V128 = _round_up(V, 128)
    tv_cands = [t for t in (1024, 512, 256, 128) if t <= V128]
    if not tv_cands:
        tv_cands = [V128]
    for tr in tr_cands:
        for tv in tv_cands:
            if _vmem_need(tr, tv, H) <= budget:
                return tr, tv
    return tr_cands[-1], tv_cands[-1]


def policy_head_kernel(hidden_ref, w_ref, labels_ref,
                       orig_ref, scaled_ref, logprobs_ref, ent_ref,
                       m_sc, l_sc, s_sc, lab_sc,
                       *, inv_t, tile_v, pad_id, v_actual, v_padded):
    """One (row-tile, vocab-tile) step: LM-head matmul + online softmax."""
    j = pl.program_id(1)

    @pl.when(j == 0)
    def _init():
        m_sc[...] = jnp.full_like(m_sc, -jnp.inf)
        l_sc[...] = jnp.zeros_like(l_sc)
        s_sc[...] = jnp.zeros_like(s_sc)
        lab_sc[...] = jnp.zeros_like(lab_sc)

    # bf16 x bf16 -> f32 on the MXU.
    raw = jnp.dot(hidden_ref[...], w_ref[...],
                  preferred_element_type=jnp.float32)          # (TR, TV) f32
    orig_ref[...] = raw.astype(orig_ref.dtype)                 # unscaled slab

    z = raw * inv_t                                            # scaled logits
    scaled_ref[...] = z.astype(scaled_ref.dtype)               # scaled slab

    lane_iota = jax.lax.broadcasted_iota(jnp.int32, z.shape, 1)  # static iota

    # Mask out padded vocab columns (only when V was padded).
    if v_padded != v_actual:
        limit = v_actual - j * tile_v                          # scalar
        valid = lane_iota < limit
        z_for_max = jnp.where(valid, z, -jnp.inf)
    else:
        valid = None
        z_for_max = z

    # ---- online softmax statistics ----
    m_prev = m_sc[...]
    m_new = jnp.maximum(m_prev, jnp.max(z_for_max, axis=-1, keepdims=True))
    alpha = jnp.exp(m_prev - m_new)                            # 0 at j == 0
    e = jnp.exp(z - m_new)
    if valid is not None:
        e = jnp.where(valid, e, 0.0)
    l_sc[...] = alpha * l_sc[...] + jnp.sum(e, axis=-1, keepdims=True)
    s_sc[...] = alpha * s_sc[...] + jnp.sum(e * z, axis=-1, keepdims=True)
    m_sc[...] = m_new

    # ---- masked running accumulation of the label column ----
    labels = labels_ref[...]                                   # (TR, 1) i32
    rel = labels - j * tile_v                                  # (TR, 1) i32
    lab_sc[...] += jnp.sum(jnp.where(lane_iota == rel, z, 0.0),
                           axis=-1, keepdims=True)

    # ---- finalize once per row tile ----
    @pl.when(j == pl.num_programs(1) - 1)
    def _finalize():
        l = l_sc[...]
        log_z = m_sc[...] + jnp.log(l)
        # entropy = logZ - E_p[z]   (no p / logp materialization)
        ent_ref[...] = log_z - s_sc[...] / l
        tok_logp = lab_sc[...] - log_z
        # TODO(synk): padded positions still contribute entropy (matches the
        # reference, which only ignore_index-masks the logprobs).
        logprobs_ref[...] = jnp.where(labels_ref[...] == pad_id, 0.0, tok_logp)


def policy_head_pallas(hidden, lm_head_w, labels, temperature,
                       logits_dtype=jnp.bfloat16):
    """hidden: (R, H) bf16; lm_head_w: (H, V) bf16; labels: (R, 1) i32.

    Returns (original_logits (R,V), scaled_logits (R,V), logprobs (R,1),
    entropies (R,1))."""
    R, H = hidden.shape
    H2, V = lm_head_w.shape
    assert H == H2

    budget = _vmem_budget()
    tile_r, tile_v = _choose_tiles(R, H, V, budget)
    R_pad = _round_up(max(R, tile_r), tile_r)
    V_pad = _round_up(max(V, tile_v), tile_v)

    if R_pad != R:
        hidden = jnp.pad(hidden, ((0, R_pad - R), (0, 0)))
        labels = jnp.pad(labels, ((0, R_pad - R), (0, 0)),
                         constant_values=PAD_ID)
    if V_pad != V:
        lm_head_w = jnp.pad(lm_head_w, ((0, 0), (0, V_pad - V)))

    grid = (R_pad // tile_r, V_pad // tile_v)

    kernel = functools.partial(
        policy_head_kernel,
        inv_t=float(1.0 / temperature), tile_v=tile_v, pad_id=PAD_ID,
        v_actual=V, v_padded=V_pad)

    out_dsz = jnp.dtype(logits_dtype).itemsize
    vmem_need = _vmem_need(tile_r, tile_v, H,
                           in_dsz=hidden.dtype.itemsize, out_dsz=out_dsz)
    vmem_limit = int(min(budget, max(2 * vmem_need + (4 << 20), 16 << 20)))
    vmem_limit = max(vmem_limit, vmem_need + (2 << 20))

    out_shapes = (
        jax.ShapeDtypeStruct((R_pad, V_pad), logits_dtype),  # original logits
        jax.ShapeDtypeStruct((R_pad, V_pad), logits_dtype),  # scaled logits
        jax.ShapeDtypeStruct((R_pad, 1), jnp.float32),       # per-token logprob
        jax.ShapeDtypeStruct((R_pad, 1), jnp.float32),       # per-token entropy
    )
    grid_spec = pltpu.PrefetchScalarGridSpec(
        num_scalar_prefetch=0,
        grid=grid,
        in_specs=[
            pl.BlockSpec((tile_r, H), lambda i, j: (i, 0)),   # rows: resident
            pl.BlockSpec((H, tile_v), lambda i, j: (0, j)),   # weights: stream
            pl.BlockSpec((tile_r, 1), lambda i, j: (i, 0)),   # labels
        ],
        out_specs=(
            pl.BlockSpec((tile_r, tile_v), lambda i, j: (i, j)),
            pl.BlockSpec((tile_r, tile_v), lambda i, j: (i, j)),
            pl.BlockSpec((tile_r, 1), lambda i, j: (i, 0)),
            pl.BlockSpec((tile_r, 1), lambda i, j: (i, 0)),
        ),
        scratch_shapes=[
            pltpu.VMEM((tile_r, 1), jnp.float32),  # running max m
            pltpu.VMEM((tile_r, 1), jnp.float32),  # running sum l
            pltpu.VMEM((tile_r, 1), jnp.float32),  # running sum e*z
            pltpu.VMEM((tile_r, 1), jnp.float32),  # label logit accumulator
        ],
    )

    cost = pl.CostEstimate(
        flops=2 * R_pad * H * V_pad,
        transcendentals=R_pad * V_pad + 4 * R_pad * grid[1],
        bytes_accessed=(R_pad * H * hidden.dtype.itemsize
                        + grid[0] * H * V_pad * lm_head_w.dtype.itemsize
                        + 2 * R_pad * V_pad * out_dsz
                        + R_pad * (4 + 2 * 4)),
    )

    orig, scaled, logprobs, ent = pl.pallas_call(
        kernel,
        out_shape=out_shapes,
        grid_spec=grid_spec,
        cost_estimate=cost,
        compiler_params=pltpu.CompilerParams(
            dimension_semantics=("parallel", "arbitrary"),
            vmem_limit_bytes=vmem_limit),
    )(hidden, lm_head_w, labels)

    if V_pad != V:
        orig = orig[:, :V]
        scaled = scaled[:, :V]
    if R_pad != R:
        orig = orig[:R]
        scaled = scaled[:R]
        logprobs = logprobs[:R]
        ent = ent[:R]
    return orig, scaled, logprobs, ent


def policy_forward(params, queries, query_attn_masks, responses,
                   temperature=1.0):
    """Concrete Policy.forward: dict of original_logits, logits, logprobs,
    entropies for the response tokens."""
    del query_attn_masks  # synthetic base model is position-independent
    B, _ = queries.shape
    _, Rlen = responses.shape

    input_ids = jnp.concatenate([queries, responses], axis=1)     # (B, T)
    hidden_all = params["embedding"][input_ids]                   # (B, T, H)
    # positions whose logits predict the response tokens:
    hidden = hidden_all[:, -Rlen - 1:-1, :]                       # (B, Rlen, H)
    H = hidden.shape[-1]
    V = params["lm_head"].shape[1]

    # bf16 operands for the MXU; accumulation stays f32 inside the kernel.
    hidden2d = hidden.reshape(B * Rlen, H).astype(jnp.bfloat16)
    lm_head = params["lm_head"].astype(jnp.bfloat16)
    labels = responses.reshape(B * Rlen, 1).astype(jnp.int32)

    orig2d, scaled2d, logprobs2d, ent2d = policy_head_pallas(
        hidden2d, lm_head, labels, float(temperature))

    return dict(
        original_logits=orig2d.reshape(B, Rlen, V),
        logits=scaled2d.reshape(B, Rlen, V),   # written by the kernel; no
        logprobs=logprobs2d.reshape(B, Rlen),  # full-slab multiply in XLA
        entropies=ent2d.reshape(B, Rlen),
    )


def _reference(params, queries, responses, temperature):
    """Pure-JAX reference with the same bf16-cast operands."""
    _, Rlen = responses.shape
    input_ids = jnp.concatenate([queries, responses], axis=1)
    hidden = params["embedding"][input_ids][:, -Rlen - 1:-1, :]
    h = hidden.astype(jnp.bfloat16).astype(jnp.float32)
    w = params["lm_head"].astype(jnp.bfloat16).astype(jnp.float32)
    original = jnp.einsum("brh,hv->brv", h, w)
    logits = original / temperature
    logp = jax.nn.log_softmax(logits, axis=-1)
    tok = jnp.take_along_axis(logp, responses[..., None], axis=-1)[..., 0]
    tok = jnp.where(responses == PAD_ID, 0.0, tok)
    p = jax.nn.softmax(logits, axis=-1)
    ent = -jnp.sum(p * logp, axis=-1)
    return original, logits, tok, ent


if __name__ == "__main__":
    B, Qlen, Rlen, H, V = 2, 8, 8, 32, 128
    key = jax.random.PRNGKey(0)
    k_emb, k_head, k_q, k_r = jax.random.split(key, 4)

    params = {
        "embedding": jax.random.normal(k_emb, (V, H), jnp.float32) * 0.5,
        "lm_head":   jax.random.normal(k_head, (H, V), jnp.float32) * 0.5,
    }
    queries = jax.random.randint(k_q, (B, Qlen), 1, V, dtype=jnp.int32)
    responses = jax.random.randint(k_r, (B, Rlen), 1, V, dtype=jnp.int32)
    query_attn_masks = jnp.ones((B, Qlen), dtype=jnp.int32)

    temperature = 0.7
    out = policy_forward(params, queries, query_attn_masks, responses,
                         temperature=temperature)
    jax.block_until_ready(out)

    assert out["original_logits"].shape == (B, Rlen, V)
    assert out["logits"].shape == (B, Rlen, V)
    assert out["logprobs"].shape == (B, Rlen)
    assert out["entropies"].shape == (B, Rlen)

    ref_orig, ref_logits, ref_logp, ref_ent = _reference(
        params, queries, responses, temperature)
    assert jnp.allclose(out["original_logits"].astype(jnp.float32),
                        ref_orig, atol=3e-2, rtol=3e-2)
    assert jnp.allclose(out["logits"].astype(jnp.float32),
                        ref_logits, atol=3e-2, rtol=3e-2)
    assert jnp.allclose(out["logprobs"], ref_logp, atol=2e-2, rtol=2e-2)
    assert jnp.allclose(out["entropies"], ref_ent, atol=2e-2, rtol=2e-2)
    print("KERNEL_OK")
</pallas_src>

<mosaic_0001>
module attributes {stable_mosaic.version = 11 : i64} {
  func.func @policy_head_kernel(%arg0: i32, %arg1: i32, %arg2: memref<16x32xbf16, #tpu.memory_space<vmem>>, %arg3: memref<32x128xbf16, #tpu.memory_space<vmem>>, %arg4: memref<16x1xi32, #tpu.memory_space<vmem>>, %arg5: memref<16x128xbf16, #tpu.memory_space<vmem>>, %arg6: memref<16x128xbf16, #tpu.memory_space<vmem>>, %arg7: memref<16x1xf32, #tpu.memory_space<vmem>>, %arg8: memref<16x1xf32, #tpu.memory_space<vmem>>, %arg9: memref<16x1xf32, #tpu.memory_space<vmem>>, %arg10: memref<16x1xf32, #tpu.memory_space<vmem>>, %arg11: memref<16x1xf32, #tpu.memory_space<vmem>>, %arg12: memref<16x1xf32, #tpu.memory_space<vmem>>) attributes {dimension_semantics = [#tpu.dimension_semantics<parallel>, #tpu.dimension_semantics<arbitrary>], iteration_bounds = array<i64: 1, 1>, scalar_prefetch = 0 : i64, scratch_operands = 4 : i64, tpu.core_type = #tpu.core_type<tc>, window_params = [{transform_indices = @transform_0, window_bounds = array<i64: 16, 32>}, {transform_indices = @transform_1, window_bounds = array<i64: 32, 128>}, {transform_indices = @transform_2, window_bounds = array<i64: 16, 1>}, {transform_indices = @transform_3, window_bounds = array<i64: 16, 128>}, {transform_indices = @transform_4, window_bounds = array<i64: 16, 128>}, {transform_indices = @transform_5, window_bounds = array<i64: 16, 1>}, {transform_indices = @transform_6, window_bounds = array<i64: 16, 1>}]} {
    %c0_i32 = arith.constant 0 : i32
    %0 = arith.cmpi eq, %arg1, %c0_i32 : i32
    %1 = arith.extui %0 : i1 to i32
    %c0_i32_0 = arith.constant 0 : i32
    %2 = arith.cmpi ne, %1, %c0_i32_0 : i32
    scf.if %2 {
      %cst_34 = arith.constant 0xFF800000 : f32
      %52 = vector.broadcast %cst_34 : f32 to vector<16x1xf32>
      %c0_35 = arith.constant 0 : index
      %c0_36 = arith.constant 0 : index
      %53 = vector.load %arg9[%c0_35, %c0_36] : memref<16x1xf32, #tpu.memory_space<vmem>>, vector<16x1xf32>
      tpu.vector_store %arg9[%c0_35, %c0_36], %52 {strides = array<i32>} : memref<16x1xf32, #tpu.memory_space<vmem>>, vector<16x1xf32>,
      %cst_37 = arith.constant 0.000000e+00 : f32
      %54 = vector.broadcast %cst_37 : f32 to vector<16x1xf32>
      %c0_38 = arith.constant 0 : index
      %c0_39 = arith.constant 0 : index
      %55 = vector.load %arg10[%c0_38, %c0_39] : memref<16x1xf32, #tpu.memory_space<vmem>>, vector<16x1xf32>
      tpu.vector_store %arg10[%c0_38, %c0_39], %54 {strides = array<i32>} : memref<16x1xf32, #tpu.memory_space<vmem>>, vector<16x1xf32>,
      %cst_40 = arith.constant 0.000000e+00 : f32
      %56 = vector.broadcast %cst_40 : f32 to vector<16x1xf32>
      %c0_41 = arith.constant 0 : index
      %c0_42 = arith.constant 0 : index
      %57 = vector.load %arg11[%c0_41, %c0_42] : memref<16x1xf32, #tpu.memory_space<vmem>>, vector<16x1xf32>
      tpu.vector_store %arg11[%c0_41, %c0_42], %56 {strides = array<i32>} : memref<16x1xf32, #tpu.memory_space<vmem>>, vector<16x1xf32>,
      %cst_43 = arith.constant 0.000000e+00 : f32
      %58 = vector.broadcast %cst_43 : f32 to vector<16x1xf32>
      %c0_44 = arith.constant 0 : index
      %c0_45 = arith.constant 0 : index
      %59 = vector.load %arg12[%c0_44, %c0_45] : memref<16x1xf32, #tpu.memory_space<vmem>>, vector<16x1xf32>
      tpu.vector_store %arg12[%c0_44, %c0_45], %58 {strides = array<i32>} : memref<16x1xf32, #tpu.memory_space<vmem>>, vector<16x1xf32>,
    } else {
    }
    %c0 = arith.constant 0 : index
    %c0_1 = arith.constant 0 : index
    %3 = vector.load %arg2[%c0, %c0_1] : memref<16x32xbf16, #tpu.memory_space<vmem>>, vector<16x32xbf16>
    %c0_2 = arith.constant 0 : index
    %c0_3 = arith.constant 0 : index
    %4 = vector.load %arg3[%c0_2, %c0_3] : memref<32x128xbf16, #tpu.memory_space<vmem>>, vector<32x128xbf16>
    %cst = arith.constant dense<0.000000e+00> : vector<16x128xf32>
    %5 = tpu.matmul %3, %4, %cst {dimension_numbers = #tpu.dot_dimension_numbers<[1], [0], [0], [1], [0, 0, 1, 1], [], []>} : vector<16x32xbf16>, vector<32x128xbf16>, vector<16x128xf32> -> vector<16x128xf32>
    %6 = arith.truncf %5 : vector<16x128xf32> to vector<16x128xbf16>
    %c0_4 = arith.constant 0 : index
    %c0_5 = arith.constant 0 : index
    %7 = vector.load %arg5[%c0_4, %c0_5] : memref<16x128xbf16, #tpu.memory_space<vmem>>, vector<16x128xbf16>
    tpu.vector_store %arg5[%c0_4, %c0_5], %6 {strides = array<i32>} : memref<16x128xbf16, #tpu.memory_space<vmem>>, vector<16x128xbf16>,
    %cst_6 = arith.constant 1.42857146 : f32
    %8 = vector.broadcast %cst_6 : f32 to vector<16x128xf32>
    %9 = arith.mulf %5, %8 : vector<16x128xf32>
    %10 = arith.truncf %9 : vector<16x128xf32> to vector<16x128xbf16>
    %c0_7 = arith.constant 0 : index
    %c0_8 = arith.constant 0 : index
    %11 = vector.load %arg6[%c0_7, %c0_8] : memref<16x128xbf16, #tpu.memory_space<vmem>>, vector<16x128xbf16>
    tpu.vector_store %arg6[%c0_7, %c0_8], %10 {strides = array<i32>} : memref<16x128xbf16, #tpu.memory_space<vmem>>, vector<16x128xbf16>,
    %12 = tpu.iota {dimensions = array<i32: 1>} : vector<16x128xi32>
    %c0_9 = arith.constant 0 : index
    %c0_10 = arith.constant 0 : index
    %13 = vector.load %arg9[%c0_9, %c0_10] : memref<16x1xf32, #tpu.memory_space<vmem>>, vector<16x1xf32>
    %cst_11 = arith.constant dense<0xFF800000> : vector<16xf32>
    %14 = vector.multi_reduction <maximumf>, %9, %cst_11 [1] : vector<16x128xf32> to vector<16xf32>
    %15 = vector.shape_cast %14 : vector<16xf32> to vector<16x1xf32>
    %16 = arith.maximumf %13, %15 : vector<16x1xf32>
    %17 = arith.subf %13, %16 : vector<16x1xf32>
    %18 = math.exp %17 : vector<16x1xf32>
    %19 = vector.broadcast %16 : vector<16x1xf32> to vector<16x128xf32>
    %20 = arith.subf %9, %19 : vector<16x128xf32>
    %21 = math.exp %20 : vector<16x128xf32>
    %c0_12 = arith.constant 0 : index
    %c0_13 = arith.constant 0 : index
    %22 = vector.load %arg10[%c0_12, %c0_13] : memref<16x1xf32, #tpu.memory_space<vmem>>, vector<16x1xf32>
    %23 = arith.mulf %18, %22 : vector<16x1xf32>
    %cst_14 = arith.constant dense<0.000000e+00> : vector<16xf32>
    %24 = vector.multi_reduction <add>, %21, %cst_14 [1] : vector<16x128xf32> to vector<16xf32>
    %25 = vector.shape_cast %24 : vector<16xf32> to vector<16x1xf32>
    %26 = arith.addf %23, %25 : vector<16x1xf32>
    %c0_15 = arith.constant 0 : index
    %c0_16 = arith.constant 0 : index
    %27 = vector.load %arg10[%c0_15, %c0_16] : memref<16x1xf32, #tpu.memory_space<vmem>>, vector<16x1xf32>
    tpu.vector_store %arg10[%c0_15, %c0_16], %26 {strides = array<i32>} : memref<16x1xf32, #tpu.memory_space<vmem>>, vector<16x1xf32>,
    %c0_17 = arith.constant 0 : index
    %c0_18 = arith.constant 0 : index
    %28 = vector.load %arg11[%c0_17, %c0_18] : memref<16x1xf32, #tpu.memory_space<vmem>>, vector<16x1xf32>
    %29 = arith.mulf %18, %28 : vector<16x1xf32>
    %30 = arith.mulf %21, %9 : vector<16x128xf32>
    %cst_19 = arith.constant dense<0.000000e+00> : vector<16xf32>
    %31 = vector.multi_reduction <add>, %30, %cst_19 [1] : vector<16x128xf32> to vector<16xf32>
    %32 = vector.shape_cast %31 : vector<16xf32> to vector<16x1xf32>
    %33 = arith.addf %29, %32 : vector<16x1xf32>
    %c0_20 = arith.constant 0 : index
    %c0_21 = arith.constant 0 : index
    %34 = vector.load %arg11[%c0_20, %c0_21] : memref<16x1xf32, #tpu.memory_space<vmem>>, vector<16x1xf32>
    tpu.vector_store %arg11[%c0_20, %c0_21], %33 {strides = array<i32>} : memref<16x1xf32, #tpu.memory_space<vmem>>, vector<16x1xf32>,
    %c0_22 = arith.constant 0 : index
    %c0_23 = arith.constant 0 : index
    %35 = vector.load %arg9[%c0_22, %c0_23] : memref<16x1xf32, #tpu.memory_space<vmem>>, vector<16x1xf32>
    tpu.vector_store %arg9[%c0_22, %c0_23], %16 {strides = array<i32>} : memref<16x1xf32, #tpu.memory_space<vmem>>, vector<16x1xf32>,
    %c0_24 = arith.constant 0 : index
    %c0_25 = arith.constant 0 : index
    %36 = vector.load %arg4[%c0_24, %c0_25] : memref<16x1xi32, #tpu.memory_space<vmem>>, vector<16x1xi32>
    %c128_i32 = arith.constant 128 : i32
    %37 = arith.muli %arg1, %c128_i32 : i32
    %38 = vector.broadcast %37 : i32 to vector<16x1xi32>
    %39 = arith.subi %36, %38 : vector<16x1xi32>
    %c0_26 = arith.constant 0 : index
    %c0_27 = arith.constant 0 : index
    %40 = vector.load %arg12[%c0_26, %c0_27] : memref<16x1xf32, #tpu.memory_space<vmem>>, vector<16x1xf32>
    %41 = vector.broadcast %39 : vector<16x1xi32> to vector<16x128xi32>
    %42 = arith.cmpi eq, %12, %41 : vector<16x128xi32>
    %cst_28 = arith.constant 0.000000e+00 : f32
    %43 = vector.broadcast %cst_28 : f32 to vector<16x128xf32>
    %44 = arith.select %42, %9, %43 : vector<16x128xi1>, vector<16x128xf32>
    %cst_29 = arith.constant dense<0.000000e+00> : vector<16xf32>
    %45 = vector.multi_reduction <add>, %44, %cst_29 [1] : vector<16x128xf32> to vector<16xf32>
    %46 = vector.shape_cast %45 : vector<16xf32> to vector<16x1xf32>
    %47 = arith.addf %40, %46 : vector<16x1xf32>
    %c0_30 = arith.constant 0 : index
    %c0_31 = arith.constant 0 : index
    %48 = vector.load %arg12[%c0_30, %c0_31] : memref<16x1xf32, #tpu.memory_space<vmem>>, vector<16x1xf32>
    tpu.vector_store %arg12[%c0_30, %c0_31], %47 {strides = array<i32>} : memref<16x1xf32, #tpu.memory_space<vmem>>, vector<16x1xf32>,
    %c0_i32_32 = arith.constant 0 : i32
    %49 = arith.cmpi eq, %arg1, %c0_i32_32 : i32
    %50 = arith.extui %49 : i1 to i32
    %c0_i32_33 = arith.constant 0 : i32
    %51 = arith.cmpi ne, %50, %c0_i32_33 : i32
    scf.if %51 {
      %c0_34 = arith.constant 0 : index
      %c0_35 = arith.constant 0 : index
      %52 = vector.load %arg10[%c0_34, %c0_35] : memref<16x1xf32, #tpu.memory_space<vmem>>, vector<16x1xf32>
      %c0_36 = arith.constant 0 : index
      %c0_37 = arith.constant 0 : index
      %53 = vector.load %arg9[%c0_36, %c0_37] : memref<16x1xf32, #tpu.memory_space<vmem>>, vector<16x1xf32>
      %54 = math.log %52 : vector<16x1xf32>
      %55 = arith.addf %53, %54 : vector<16x1xf32>
      %c0_38 = arith.constant 0 : index
      %c0_39 = arith.constant 0 : index
      %56 = vector.load %arg11[%c0_38, %c0_39] : memref<16x1xf32, #tpu.memory_space<vmem>>, vector<16x1xf32>
      %57 = arith.divf %56, %52 : vector<16x1xf32>
      %58 = arith.subf %55, %57 : vector<16x1xf32>
      %c0_40 = arith.constant 0 : index
      %c0_41 = arith.constant 0 : index
      %59 = vector.load %arg8[%c0_40, %c0_41] : memref<16x1xf32, #tpu.memory_space<vmem>>, vector<16x1xf32>
      tpu.vector_store %arg8[%c0_40, %c0_41], %58 {strides = array<i32>} : memref<16x1xf32, #tpu.memory_space<vmem>>, vector<16x1xf32>,
      %c0_42 = arith.constant 0 : index
      %c0_43 = arith.constant 0 : index
      %60 = vector.load %arg12[%c0_42, %c0_43] : memref<16x1xf32, #tpu.memory_space<vmem>>, vector<16x1xf32>
      %61 = arith.subf %60, %55 : vector<16x1xf32>
      %c0_44 = arith.constant 0 : index
      %c0_45 = arith.constant 0 : index
      %62 = vector.load %arg4[%c0_44, %c0_45] : memref<16x1xi32, #tpu.memory_space<vmem>>, vector<16x1xi32>
      %c0_i32_46 = arith.constant 0 : i32
      %63 = vector.broadcast %c0_i32_46 : i32 to vector<16x1xi32>
      %64 = arith.cmpi eq, %62, %63 : vector<16x1xi32>
      %cst_47 = arith.constant 0.000000e+00 : f32
      %65 = vector.broadcast %cst_47 : f32 to vector<16x1xf32>
      %66 = arith.select %64, %65, %61 : vector<16x1xi1>, vector<16x1xf32>
      %c0_48 = arith.constant 0 : index
      %c0_49 = arith.constant 0 : index
      %67 = vector.load %arg7[%c0_48, %c0_49] : memref<16x1xf32, #tpu.memory_space<vmem>>, vector<16x1xf32>
      tpu.vector_store %arg7[%c0_48, %c0_49], %66 {strides = array<i32>} : memref<16x1xf32, #tpu.memory_space<vmem>>, vector<16x1xf32>,
    } else {
    }
    return
  }
  func.func @transform_0(%arg0: i32, %arg1: i32) -> (i32, i32) {
    %c0_i32 = arith.constant 0 : i32
    %c0_i32_0 = arith.constant 0 : i32
    return %arg0, %c0_i32 : i32, i32
  }
  func.func @transform_1(%arg0: i32, %arg1: i32) -> (i32, i32) {
    %c0_i32 = arith.constant 0 : i32
    %c0_i32_0 = arith.constant 0 : i32
    return %c0_i32, %arg1 : i32, i32
  }
  func.func @transform_2(%arg0: i32, %arg1: i32) -> (i32, i32) {
    %c0_i32 = arith.constant 0 : i32
    %c0_i32_0 = arith.constant 0 : i32
    return %arg0, %c0_i32 : i32, i32
  }
  func.func @transform_3(%arg0: i32, %arg1: i32) -> (i32, i32) {
    %c0_i32 = arith.constant 0 : i32
    return %arg0, %arg1 : i32, i32
  }
  func.func @transform_4(%arg0: i32, %arg1: i32) -> (i32, i32) {
    %c0_i32 = arith.constant 0 : i32
    return %arg0, %arg1 : i32, i32
  }
  func.func @transform_5(%arg0: i32, %arg1: i32) -> (i32, i32) {
    %c0_i32 = arith.constant 0 : i32
    %c0_i32_0 = arith.constant 0 : i32
    return %arg0, %c0_i32 : i32, i32
  }
  func.func @transform_6(%arg0: i32, %arg1: i32) -> (i32, i32) {
    %c0_i32 = arith.constant 0 : i32
    %c0_i32_0 = arith.constant 0 : i32
    return %arg0, %c0_i32 : i32, i32
  }
}

</mosaic_0001>

<bundles_post_ra>
// kernel: tpu_custom_call.1
= control target key start
LH: loop header
LB: loop body
LE: loop exit
PB: predicated region body
PF: predicated region fallthrough
CT: control target
= control target key end

     0   :  { %12 = vsyncpa [#allocation7], 0  ;;  %s608_s0 = inlined_call_operand.hbm [shape: bf16[16,32], index: 0, kind: input, shape index: {}]   ;;  %s609_s1 = inlined_call_operand.vmem [shape: bf16[32,128], index: 1, kind: input, shape index: {}]   ;;  %s610_s2 = inlined_call_operand.vmem [shape: s32[16,1], index: 2, kind: input, shape index: {}]   ;;  %s611_s3 = inlined_call_operand.hbm [shape: bf16[16,128], index: 3, kind: output, shape index: {0}]   ;;  %s612_s4 = inlined_call_operand.hbm [shape: bf16[16,128], index: 4, kind: output, shape index: {1}]   ;;  %s613_s5 = inlined_call_operand.vmem [shape: f32[16,1], index: 5, kind: output, shape index: {2}]   ;;  %s614_s6 = inlined_call_operand.vmem [shape: f32[16,1], index: 6, kind: output, shape index: {3}]  }
   0x1   :  { %13 = vsyncpa [#allocation8], 0 }
   0x2   :  { %14 = vsyncpa [#allocation11], 0  ;;  %s436_s21 = smov [#allocation6]   ;;  %s364_s25 = scalar_lea.hbm %s608_s0, 128 }
   0x3   :  { %s20_s22 = sshll.u32 %s436_s21, 4  ;;  %p365_p0 = scmp.ne.s32.totalorder %s608_s0, %s364_s25  ;;  %s21_s22 = int_to_ptr.vmem [resolvable:$true] %s20_s22 }
   0x4   :  { %p368_p1 = scmp.lt.u32.totalorder %s364_s25, %s608_s0 }
   0x6   :  { %p370_p2 = pnand %p368_p1, %p365_p0 }
   0x8   :  { %373 = shalt.err (!%p370_p2)
}
   0x9   :  { %s374_s30 = scalar_lea.vmem %s21_s22, 128  ;;  %p379_p4 = scmp.lt.s32.totalorder %s21_s22, %s21_s22 }
   0xa   :  { %p375_p3 = scmp.ne.s32.totalorder %s21_s22, %s374_s30  ;;  %p380_p5 = scmp.lt.s32.totalorder %s374_s30, %s374_s30 }
   0xc   :  { %p381_p6 = por %p380_p5, %p379_p4 }
   0xe   :  { %p382_p7 = pnand %p381_p6, %p375_p3 }
  0x10   :  { %385 = shalt.err (!%p382_p7)
}
  0x11   :  { %s437_s7 = smov 64   ;;  %s438_s8 = smov 4  }
  0x12   :  { %26 = dma.hbm_to_vmem [thread:$0]  %s608_s0, 128, %s21_s22, [#allocation7], %s437_s7, %s437_s7, %s438_s8  }
  0x13   :  { %430 = dma.done.wait [#allocation7], 128  }
  0x14   :  { %431 = vsyncadd [#allocation7], 4294967168  ;;  %v439_v0 = vmov 0.0   ;;  %vm440_vm0 = vmmov 0   ;;  %v345_v1 = vld [vmem:[%s609_s1] sm:$0xff]   ;;  %v346_v2 = vld [vmem:[%s609_s1 + $0x8] sm:$0xff]   ;;  %v138_v30 = vlaneseq }
  0x15   :  { %326 = vmatprep.subr.bf16.mxu0 %v439_v0  ;;  %330 = vmatprep.mubr.msk.bf16.mxu0 %vm440_vm0, %v439_v0  ;;  %v347_v3 = vld [vmem:[#allocation6] sm:$0xff]   ;;  %vm71_vm1 = vcmask 261120   ;;  %v441_v4 = vmov 0   ;;  %vm39_vm2 = vcmask 7168   ;;  %v442_v5 = vmov -inf   ;;  %v538_v23 = vld [vmem:[%s610_s2 + $0x8] sm:$0xff] }
  0x16   :  { %327 = vmatpush3.bf16.msra.mxu0 %v345_v1  ;;  %344 = vset.pattern.permute.xlu0 %v441_v4  ;;  %40 = vst.msk [vmem:[#allocation2] sm:$0xff] %vm39_vm2, %v442_v5  ;;  %41 = vst.msk [vmem:[#allocation2 + $0x8] sm:$0xff] %vm39_vm2, %v442_v5  ;;  %v512_v14 = vld [vmem:[%s610_s2] sm:$0xff]  ;;  %v139_v32 = vand.u32 127, %v138_v30  ;;  %s443_s2 = smov [#allocation9]   ;;  %s444_s18 = smov [#allocation10]  }
  0x17   :  { %328 = vmatprep.subr.bf16.mxu0 %v439_v0  ;;  %343 = vset.pattern.permute.xlu1 %v441_v4  ;;  %42 = vst.msk [vmem:[#allocation3] sm:$0xff] %vm39_vm2, %v439_v0  ;;  %43 = vst.msk [vmem:[#allocation3 + $0x8] sm:$0xff] %vm39_vm2, %v439_v0  ;;  %s265_s17 = sshll.u32 %s443_s2, 4  ;;  %s277_s19 = sshll.u32 %s444_s18, 4  ;;  %s266_s17 = int_to_ptr.vmem [resolvable:$true] %s265_s17  ;;  %s541_s19 = int_to_ptr.vmem [resolvable:$true] %s277_s19 }
  0x18   :  { %44 = vst.msk [vmem:[#allocation4] sm:$0xff] %vm39_vm2, %v439_v0  ;;  %45 = vst.msk [vmem:[#allocation4 + $0x8] sm:$0xff] %vm39_vm2, %v439_v0  ;;  %s386_s20 = scalar_lea.vmem %s266_s17, 128  ;;  %p391_p9 = scmp.lt.s32.totalorder %s266_s17, %s266_s17 }
  0x19   :  { %46 = vst.msk [vmem:[#allocation5] sm:$0xff] %vm39_vm2, %v439_v0  ;;  %47 = vst.msk [vmem:[#allocation5 + $0x8] sm:$0xff] %vm39_vm2, %v439_v0  ;;  %p387_p8 = scmp.ne.s32.totalorder %s266_s17, %s386_s20  ;;  %p392_p10 = scmp.lt.s32.totalorder %s386_s20, %s386_s20 }
  0x1a   :  { %329 = vmatpush3.bf16.msra.mxu0 %v346_v2 }
  0x1b   :  { %p393_p11 = por %p392_p10, %p391_p9 }
  0x1d   :  { %331 = vmatmul.mubr.msk.bf16.vlgmr.msra.gmra.mrb[0].mxu0 %vm71_vm1, %v347_v3  ;;  %v515_v15 = vld [vmem:[#allocation2] sm:$0xff]  ;;  %v520_v18 = vld [vmem:[#allocation2 + $0x8] sm:$0xff]  ;;  %p394_p12 = pnand %p393_p11, %p387_p8 }
  0xf0   :  { %v109_v6 = vpop.f32.mrb[0].mxu0 }
  0xf1   :  { %v126_v7 = vmul.f32 1.4285715, %v109_v6  ;;  %v332_v8 = vpop.f32.mrb[1].mxu0 }
  0xf2   :  { %v112_v9 = vpop.f32.mrb[2].mxu0 }
  0xf3   :  { %v316_v10 = vpack.c.bf16 %v112_v9, %v109_v6  ;;  %v127_v11 = vmul.f32 1.4285715, %v112_v9  ;;  %142 = vmax.xlane.f32.xlu0 %v126_v7  ;;  %v333_v12 = vpop.f32.mrb[3].mxu0 }
  0xf5   :  { %317 = vst [vmem:[#allocation9] sm:$0xff] %v316_v10   ;;  %v321_v13 = vpack.c.bf16 %v127_v11, %v126_v7 }
  0xf7   :  { %144 = vmax.xlane.f32.xlu0 %v127_v11  ;;  %322 = vst [vmem:[#allocation10] sm:$0xff] %v321_v13  }
 0x10d   :  { %208 = vperm.xlu0 %344, %v512_v14  }
 0x180   :  { %v143_v16 = vpop.xlane.xlu0 %142 }
 0x181   :  { %v518_v17 = vmax.f32 %v515_v15, %v143_v16 }
 0x183   :  { %v148_v19 = vsub.f32 %v515_v15, %v518_v17  ;;  %197 = vst.msk [vmem:[#allocation2] sm:$0xff] %vm39_vm2, %v518_v17  ;;  %156 = vperm.xlu1 %343, %v518_v17  }
 0x184   :  { %v145_v20 = vpop.xlane.xlu0 %144 }
 0x185   :  { %v528_v21 = vmax.f32 %v520_v18, %v145_v20 }
 0x187   :  { %v149_v22 = vsub.f32 %v520_v18, %v528_v21  ;;  %198 = vst.msk [vmem:[#allocation2 + $0x8] sm:$0xff] %vm39_vm2, %v528_v21  ;;  %161 = vperm.xlu1 %343, %v528_v21  }
 0x18b   :  { %211 = vperm.xlu1 %343, %v538_v23  }
 0x18c   :  { %v209_v34 = vpop.permute.xlu0 %208 }
 0x18d   :  { %vm213_vm3 = vcmp.eq.s32.totalorder %v139_v32, %v209_v34 }
 0x18e   :  { %v215_v36 = vsel %vm213_vm3, %v126_v7, 0.0 }
 0x202   :  { %v157_v24 = vpop.permute.xlu1 %156 }
 0x203   :  { %v164_v25 = vsub.f32 %v126_v7, %v157_v24 }
 0x205   :  { %v166_v26 = vmul.f32 1.442695, %v164_v25 }
 0x206   :  { %v162_v27 = vpop.permute.xlu1 %161 }
 0x207   :  { %348 = vpow2.f32 %v166_v26  ;;  %v165_v28 = vsub.f32 %v127_v11, %v162_v27 }
 0x209   :  { %v168_v29 = vmul.f32 1.442695, %v165_v28 }
 0x20a   :  { %v212_v37 = vpop.permute.xlu1 %211 }
 0x20b   :  { %350 = vpow2.f32 %v168_v29  ;;  %vm214_vm4 = vcmp.eq.s32.totalorder %v139_v32, %v212_v37 }
 0x20c   :  { %v216_v39 = vsel %vm214_vm4, %v127_v11, 0.0 }
 0x211   :  { %v349_v31 = vpop.eup %348 }
 0x212   :  { %174 = vadd.xlane.f32.xlu1 %v349_v31  ;;  %v187_v33 = vmul.f32 %v349_v31, %v126_v7 }
 0x214   :  { %189 = vadd.xlane.f32.xlu0 %v187_v33 }
 0x215   :  { %v351_v35 = vpop.eup %350 }
 0x216   :  { %176 = vadd.xlane.f32.xlu1 %v351_v35  ;;  %v188_v38 = vmul.f32 %v351_v35, %v127_v11 }
 0x21a   :  { %217 = vadd.xlane.f32.xlu1 %v215_v36 }
 0x21e   :  { %191 = vadd.xlane.f32.xlu1 %v188_v38 }
 0x222   :  { %219 = vadd.xlane.f32.xlu1 %v216_v39 }
 0x223   :  { %397 = shalt.err (!%p394_p12)
}
 0x224   :  { %s398_s23 = scalar_lea.hbm %s611_s3, 128 }
 0x225   :  { %p399_p13 = scmp.ne.s32.totalorder %s611_s3, %s398_s23  ;;  %p402_p0 = scmp.lt.u32.totalorder %s398_s23, %s611_s3 }
 0x227   :  { %p404_p1 = pnand %p402_p0, %p399_p13 }
 0x229   :  { %407 = shalt.err (!%p404_p1)
}
 0x22a   :  { %271 = dma.vmem_to_hbm [thread:$0]  %s266_s17, 128, %s611_s3, [#allocation8], %s437_s7, %s437_s7, %s438_s8  }
 0x22b   :  { %s408_s30 = scalar_lea.vmem %s541_s19, 128  ;;  %p413_p3 = scmp.lt.s32.totalorder %s541_s19, %s541_s19 }
 0x22c   :  { %p409_p2 = scmp.ne.s32.totalorder %s541_s19, %s408_s30  ;;  %p414_p4 = scmp.lt.s32.totalorder %s408_s30, %s408_s30 }
 0x22e   :  { %p415_p5 = por %p414_p4, %p413_p3 }
 0x230   :  { %p416_p6 = pnand %p415_p5, %p409_p2 }
 0x232   :  { %419 = shalt.err (!%p416_p6)
}
 0x233   :  { %s420_s11 = scalar_lea.hbm %s612_s4, 128 }
 0x234   :  { %p421_p7 = scmp.ne.s32.totalorder %s612_s4, %s420_s11  ;;  %p424_p8 = scmp.lt.u32.totalorder %s420_s11, %s612_s4 }
 0x236   :  { %p426_p9 = pnand %p424_p8, %p421_p7 }
 0x238   :  { %429 = shalt.err (!%p426_p9)
}
 0x239   :  { %283 = dma.vmem_to_hbm [thread:$0]  %s541_s19, 128, %s612_s4, [#allocation11], %s437_s7, %s437_s7, %s438_s8   ;;  %v150_v40 = vmul.f32 1.442695, %v148_v19  ;;  %v152_v41 = vmul.f32 1.442695, %v149_v22 }
 0x23a   :  { %v170_v43 = vld [vmem:[#allocation3] sm:$0xff]  ;;  %v183_v44 = vld [vmem:[#allocation4] sm:$0xff]  ;;  %v171_v48 = vld [vmem:[#allocation3 + $0x8] sm:$0xff]  ;;  %vm254_vm5 = vcmp.eq.s32.totalorder %v512_v14, 0  ;;  %vm255_vm6 = vcmp.eq.s32.totalorder %v538_v23, 0 }
 0x23b   :  { %352 = vpow2.f32 %v150_v40  ;;  %v205_v56 = vld [vmem:[#allocation5] sm:$0xff]  ;;  %v184_v58 = vld [vmem:[#allocation4 + $0x8] sm:$0xff]  ;;  %v206_v1 = vld [vmem:[#allocation5 + $0x8] sm:$0xff] }
 0x23c   :  { %354 = vpow2.f32 %v152_v41  ;;  %v230_v7 = vld [vmem:[#allocation2] sm:$0xff]  ;;  %v231_v18 = vld [vmem:[#allocation2 + $0x8] sm:$0xff] }
 0x245   :  { %v353_v42 = vpop.eup %352 }
 0x246   :  { %v172_v45 = vmul.f32 %v353_v42, %v170_v43  ;;  %v355_v46 = vpop.eup %354  ;;  %v185_v50 = vmul.f32 %v353_v42, %v183_v44 }
 0x247   :  { %v173_v53 = vmul.f32 %v355_v46, %v171_v48  ;;  %v186_v61 = vmul.f32 %v355_v46, %v184_v58 }
 0x29f   :  { %v175_v47 = vpop.xlane.xlu1 %174 }
 0x2a0   :  { %v178_v49 = vadd.f32 %v175_v47, %v172_v45 }
 0x2a1   :  { %v190_v51 = vpop.xlane.xlu0 %189 }
 0x2a2   :  { %181 = vst.msk [vmem:[#allocation3] sm:$0xff] %vm39_vm2, %v178_v49  ;;  %v193_v52 = vadd.f32 %v190_v51, %v185_v50 }
 0x2a3   :  { %v177_v54 = vpop.xlane.xlu1 %176 }
 0x2a4   :  { %195 = vst.msk [vmem:[#allocation4] sm:$0xff] %vm39_vm2, %v193_v52  ;;  %v179_v55 = vadd.f32 %v177_v54, %v173_v53 }
 0x2a6   :  { %182 = vst.msk [vmem:[#allocation3 + $0x8] sm:$0xff] %vm39_vm2, %v179_v55 }
 0x2a7   :  { %v218_v57 = vpop.xlane.xlu1 %217 }
 0x2a8   :  { %v221_v59 = vadd.f32 %v218_v57, %v205_v56 }
 0x2a9   :  { %v228_v60 = vld [vmem:[#allocation3] sm:$0xff] }
 0x2aa   :  { %356 = vlog2.f32 %v228_v60  ;;  %223 = vst.msk [vmem:[#allocation5] sm:$0xff] %vm39_vm2, %v221_v59 }
 0x2ab   :  { %358 = vrcp.f32 %v228_v60  ;;  %v192_v62 = vpop.xlane.xlu1 %191  ;;  %v238_v8 = vld [vmem:[#allocation4] sm:$0xff] }
 0x2ac   :  { %v194_v63 = vadd.f32 %v192_v62, %v186_v61 }
 0x2ad   :  { %v229_v0 = vld [vmem:[#allocation3 + $0x8] sm:$0xff] }
 0x2ae   :  { %360 = vlog2.f32 %v229_v0  ;;  %196 = vst.msk [vmem:[#allocation4 + $0x8] sm:$0xff] %vm39_vm2, %v194_v63 }
 0x2af   :  { %362 = vrcp.f32 %v229_v0  ;;  %v220_v2 = vpop.xlane.xlu1 %219 }
 0x2b0   :  { %v222_v3 = vadd.f32 %v220_v2, %v206_v1 }
 0x2b1   :  { %v248_v12 = vld [vmem:[#allocation5] sm:$0xff] }
 0x2b2   :  { %224 = vst.msk [vmem:[#allocation5 + $0x8] sm:$0xff] %vm39_vm2, %v222_v3 }
 0x2b4   :  { %v357_v4 = vpop.eup %356 }
 0x2b5   :  { %v359_v5 = vpop.eup %358  ;;  %v233_v6 = vmul.f32 0.6931472, %v357_v4  ;;  %v239_v19 = vld [vmem:[#allocation4 + $0x8] sm:$0xff] }
 0x2b6   :  { %v241_v9 = vmul.f32 %v359_v5, %v238_v8 }
 0x2b7   :  { %v236_v10 = vadd.f32 %v233_v6, %v230_v7 }
 0x2b8   :  { %v361_v11 = vpop.eup %360 }
 0x2b9   :  { %v363_v13 = vpop.eup %362  ;;  %v244_v15 = vsub.f32 %v236_v10, %v241_v9  ;;  %v250_v16 = vsub.f32 %v248_v12, %v236_v10  ;;  %v235_v17 = vmul.f32 0.6931472, %v361_v11  ;;  %v249_v14 = vld [vmem:[#allocation5 + $0x8] sm:$0xff] }
 0x2ba   :  { %v243_v21 = vmul.f32 %v363_v13, %v239_v19 }
 0x2bb   :  { %246 = vst.msk [vmem:[%s614_s6] sm:$0xff] %vm39_vm2, %v244_v15  ;;  %v256_v20 = vsel %vm254_vm5, 0.0, %v250_v16  ;;  %v237_v22 = vadd.f32 %v235_v17, %v231_v18 }
 0x2bc   :  { %258 = vst.msk [vmem:[%s613_s5] sm:$0xff] %vm39_vm2, %v256_v20 }
 0x2bd   :  { %v245_v24 = vsub.f32 %v237_v22, %v243_v21  ;;  %v251_v25 = vsub.f32 %v249_v14, %v237_v22 }
 0x2bf   :  { %247 = vst.msk [vmem:[%s614_s6 + $0x8] sm:$0xff] %vm39_vm2, %v245_v24  ;;  %v257_v26 = vsel %vm255_vm6, 0.0, %v251_v25 }
 0x2c0   :  { %259 = vst.msk [vmem:[%s613_s5 + $0x8] sm:$0xff] %vm39_vm2, %v257_v26 }
 0x2c1   :  { %432 = dma.done.wait [#allocation8], 128  }
 0x2c2   :  { %433 = vsyncadd [#allocation8], 4294967168 }
 0x2c3   :  { %434 = dma.done.wait [#allocation11], 128  }
 0x2c4   :  { %435 = vsyncadd [#allocation11], 4294967168 }
 0x2c5   :  { %298 = vsyncpa [#allocation7], 1 }
 0x2c6   :  { %299 = vsyncpa [#allocation8], 1 }
 0x2c7   :  { %300 = vsyncpa [#allocation11], 1 }

</bundles_post_ra>
